<compile_context>
chip_gen: v5e
topology: v5e:2x2
jax: 0.10.0
libtpu: 0.0.40
codegen_flags: <defaults>
</compile_context>

<pallas_src>
import jax
import jax.numpy as jnp
from jax.experimental import pallas as pl
from jax.experimental.pallas import tpu as pltpu

SELU_ALPHA = 1.6732632423543772
SELU_SCALE = 1.0507009873554805

# Real feature dims of the PyTorch Encoder.
D_IN, D_H0, D_H1, D_OUT = 240, 120, 60, 30
LANE = 128

# Packed weight buffer layout (all lane-padded to 128 wide, dtype = stream dtype).
W0_OFF = 0                    # rows   0:240 -> W0 (240, 128)
W1_OFF = D_IN                 # rows 240:368 -> W1 (128, 128)
W2_OFF = D_IN + LANE          # rows 368:496 -> W2 (128, 128)
W_ROWS = D_IN + 2 * LANE      # 496 (multiple of 8)

# Bias buffer layout (always f32, rows 8-sublane aligned).
B0_ROW, B1_ROW, B2_ROW = 0, 8, 16
B_ROWS = 24


def _round_up(n, m):
    return ((n + m - 1) // m) * m


def _selu(v):
    # SELU(x) = scale * (x if x > 0 else alpha * (exp(x) - 1))
    # exp(min(v, 0)) avoids transient inf on large positive lanes.
    return SELU_SCALE * jnp.where(
        v > 0, v, SELU_ALPHA * (jnp.exp(jnp.minimum(v, 0.0)) - 1.0)
    )


def encoder_kernel(x_ref, w_ref, b_ref, o_ref):
    cdt = w_ref.dtype  # matmul stream dtype (f32 or bf16)

    # Static slices of the VMEM-resident packed buffers (no copies).
    w0 = w_ref[W0_OFF:W0_OFF + D_IN, :]       # (240, 128)
    w1 = w_ref[W1_OFF:W1_OFF + LANE, :]       # (128, 128)
    w2 = w_ref[W2_OFF:W2_OFF + LANE, :]       # (128, 128)
    b0 = b_ref[B0_ROW:B0_ROW + 1, :]          # (1, 128) f32
    b1 = b_ref[B1_ROW:B1_ROW + 1, :]
    b2 = b_ref[B2_ROW:B2_ROW + 1, :]

    # Stage 0: (TB, 240) @ (240, 128) -> f32 acc; bias + SELU in f32.
    h = _selu(jnp.dot(x_ref[...], w0, preferred_element_type=jnp.float32) + b0)
    # Stage 1: (TB, 128) @ (128, 128)   (padded lanes of h are exactly 0)
    h = _selu(jnp.dot(h.astype(cdt), w1, preferred_element_type=jnp.float32) + b1)
    # Stage 2: (TB, 128) @ (128, 128)
    h = _selu(jnp.dot(h.astype(cdt), w2, preferred_element_type=jnp.float32) + b2)

    # Dropout(0.05): identity in eval mode.
    o_ref[...] = h.astype(o_ref.dtype)


def pack_params(raw_params, dtype=jnp.float32):
    """Pack (w0,b0,w1,b1,w2,b2) [weights stored (in,out) = torch weight.T].

    Returns (weights_packed (496,128) in `dtype`, biases (24,128) f32).
    """
    w0, b0, w1, b1, w2, b2 = raw_params
    wp = jnp.zeros((W_ROWS, LANE), dtype)
    wp = wp.at[W0_OFF:W0_OFF + D_IN, :D_H0].set(w0.astype(dtype))
    wp = wp.at[W1_OFF:W1_OFF + D_H0, :D_H1].set(w1.astype(dtype))
    wp = wp.at[W2_OFF:W2_OFF + D_H1, :D_OUT].set(w2.astype(dtype))
    bp = jnp.zeros((B_ROWS, LANE), jnp.float32)
    bp = bp.at[B0_ROW, :D_H0].set(b0.reshape(-1).astype(jnp.float32))
    bp = bp.at[B1_ROW, :D_H1].set(b1.reshape(-1).astype(jnp.float32))
    bp = bp.at[B2_ROW, :D_OUT].set(b2.reshape(-1).astype(jnp.float32))
    return wp, bp


def _default_tb(stream_dtype):
    """Generation-aware default batch tile (fits scoped-VMEM defaults)."""
    try:
        kind = jax.devices()[0].device_kind.lower()
    except Exception:
        kind = ""
    big_vmem = ("v6" in kind) or ("v7" in kind)   # 32 MiB scoped default
    base = 4096 if big_vmem else 2048             # 16 MiB default elsewhere
    if jnp.dtype(stream_dtype) == jnp.dtype(jnp.bfloat16):
        base *= 2
    return base


def encoder_forward(x, packed_params, *, tb=None, out_dtype=jnp.float32):
    """x: (B, 240). packed_params: (weights, biases) from pack_params."""
    wp, bp = packed_params
    B = x.shape[0]
    if tb is None:
        tb = _default_tb(wp.dtype)

    TB = min(tb, _round_up(B, 8))                 # multiple of 8 sublanes
    # Megacore (v7x): keep at least 2 grid steps when the batch is big enough
    # that splitting keeps tiles large.
    if B >= 1024 and pl.cdiv(B, TB) < 2:
        TB = _round_up(pl.cdiv(B, 2), 8)
    grid = (pl.cdiv(B, TB),)

    # Stream x directly (no padding copy); cast only if bf16 streaming requested.
    x = x.astype(wp.dtype)

    out = pl.pallas_call(
        encoder_kernel,
        out_shape=jax.ShapeDtypeStruct((B, LANE), out_dtype),
        grid=grid,
        in_specs=[
            # Streamed batch tiles of x; last dim = full 240 (legal block).
            pl.BlockSpec((TB, D_IN), lambda i: (i, 0)),
            # Constant index_map -> fetched once, VMEM-resident for the grid.
            pl.BlockSpec((W_ROWS, LANE), lambda i: (0, 0)),
            pl.BlockSpec((B_ROWS, LANE), lambda i: (0, 0)),
        ],
        out_specs=pl.BlockSpec((TB, LANE), lambda i: (i, 0)),
        compiler_params=pltpu.CompilerParams(
            dimension_semantics=("parallel",),
        ),
    )(x, wp, bp)

    # Real 30 output lanes; left to XLA to fuse into the consumer.
    return out[:, :D_OUT]


def init_params(key):
    """Deterministic init mimicking nn.Linear's uniform(-1/sqrt(fan_in), ...)."""
    dims = [(D_IN, D_H0), (D_H0, D_H1), (D_H1, D_OUT)]
    params = []
    for i, (fan_in, fan_out) in enumerate(dims):
        kw, kb = jax.random.split(jax.random.fold_in(key, i))
        bound = 1.0 / jnp.sqrt(fan_in)
        # Stored as (in_dim, out_dim): equivalent to PyTorch weight.T
        w = jax.random.uniform(kw, (fan_in, fan_out), jnp.float32, -bound, bound)
        b = jax.random.uniform(kb, (fan_out,), jnp.float32, -bound, bound)
        params += [w, b]
    return tuple(params)


def encoder_reference(x, raw_params):
    w0, b0, w1, b1, w2, b2 = raw_params
    h = jax.nn.selu(x @ w0 + b0)
    h = jax.nn.selu(h @ w1 + b1)
    h = jax.nn.selu(h @ w2 + b2)
    return h


if __name__ == "__main__":
    key = jax.random.PRNGKey(0)
    kx, kp = jax.random.split(key)

    raw = init_params(kp)
    packed_f32 = pack_params(raw, dtype=jnp.float32)  # f32 for exact parity

    # 1) Tiny batch, single grid step: exact f32 parity.
    B = 8
    x = jax.random.normal(kx, (B, D_IN), jnp.float32)
    out = jax.block_until_ready(encoder_forward(x, packed_f32))
    ref = encoder_reference(x, raw)
    assert out.shape == (B, D_OUT), out.shape
    assert jnp.allclose(out, ref, atol=1e-5, rtol=1e-5), float(
        jnp.max(jnp.abs(out - ref))
    )

    # 2) Ragged batch: multi-step grid + partial (masked) tail block.
    B2 = 300
    x2 = jax.random.normal(jax.random.fold_in(kx, 1), (B2, D_IN), jnp.float32)
    out2 = jax.block_until_ready(encoder_forward(x2, packed_f32, tb=128))
    ref2 = encoder_reference(x2, raw)
    assert out2.shape == (B2, D_OUT), out2.shape
    assert jnp.allclose(out2, ref2, atol=1e-5, rtol=1e-5), float(
        jnp.max(jnp.abs(out2 - ref2))
    )

    # 3) bf16 streaming path (halved x/weight DMA, f32 bias/SELU/accumulate).
    packed_bf16 = pack_params(raw, dtype=jnp.bfloat16)
    out3 = jax.block_until_ready(
        encoder_forward(x2, packed_bf16, out_dtype=jnp.bfloat16)
    )
    assert out3.shape == (B2, D_OUT), out3.shape
    err = float(jnp.mean(jnp.abs(out3.astype(jnp.float32) - ref2)))
    assert bool(jnp.all(jnp.isfinite(out3.astype(jnp.float32)))) and err < 5e-2, err

    print("KERNEL_OK")
</pallas_src>

<mosaic_0001>
module attributes {stable_mosaic.version = 11 : i64} {
  func.func @encoder_kernel(%arg0: i32, %arg1: memref<8x240xf32, #tpu.memory_space<vmem>>, %arg2: memref<496x128xf32, #tpu.memory_space<vmem>>, %arg3: memref<24x128xf32, #tpu.memory_space<vmem>>, %arg4: memref<8x128xf32, #tpu.memory_space<vmem>>) attributes {dimension_semantics = [#tpu.dimension_semantics<parallel>], iteration_bounds = array<i64: 1>, scalar_prefetch = 0 : i64, scratch_operands = 0 : i64, tpu.core_type = #tpu.core_type<tc>, window_params = [{transform_indices = @transform_0, window_bounds = array<i64: 8, 240>}, {pipeline_mode = #tpu.pipeline_mode<synchronous>, transform_indices = @transform_1, window_bounds = array<i64: 496, 128>}, {pipeline_mode = #tpu.pipeline_mode<synchronous>, transform_indices = @transform_2, window_bounds = array<i64: 24, 128>}, {transform_indices = @transform_3, window_bounds = array<i64: 8, 128>}]} {
    %c0 = arith.constant 0 : index
    %c0_0 = arith.constant 0 : index
    %0 = vector.load %arg2[%c0, %c0_0] : memref<496x128xf32, #tpu.memory_space<vmem>>, vector<240x128xf32>
    %c240 = arith.constant 240 : index
    %c0_1 = arith.constant 0 : index
    %1 = vector.load %arg2[%c240, %c0_1] : memref<496x128xf32, #tpu.memory_space<vmem>>, vector<128x128xf32>
    %c368 = arith.constant 368 : index
    %c0_2 = arith.constant 0 : index
    %2 = vector.load %arg2[%c368, %c0_2] : memref<496x128xf32, #tpu.memory_space<vmem>>, vector<128x128xf32>
    %c0_3 = arith.constant 0 : index
    %c0_4 = arith.constant 0 : index
    %3 = vector.load %arg3[%c0_3, %c0_4] : memref<24x128xf32, #tpu.memory_space<vmem>>, vector<1x128xf32>
    %c8 = arith.constant 8 : index
    %c0_5 = arith.constant 0 : index
    %4 = vector.load %arg3[%c8, %c0_5] : memref<24x128xf32, #tpu.memory_space<vmem>>, vector<1x128xf32>
    %c16 = arith.constant 16 : index
    %c0_6 = arith.constant 0 : index
    %5 = vector.load %arg3[%c16, %c0_6] : memref<24x128xf32, #tpu.memory_space<vmem>>, vector<1x128xf32>
    %c0_7 = arith.constant 0 : index
    %c0_8 = arith.constant 0 : index
    %6 = vector.load %arg1[%c0_7, %c0_8] : memref<8x240xf32, #tpu.memory_space<vmem>>, vector<8x240xf32>
    %cst = arith.constant dense<0.000000e+00> : vector<8x128xf32>
    %7 = tpu.matmul %6, %0, %cst {dimension_numbers = #tpu.dot_dimension_numbers<[1], [0], [0], [1], [0, 0, 1, 1], [], []>} : vector<8x240xf32>, vector<240x128xf32>, vector<8x128xf32> -> vector<8x128xf32>
    %8 = vector.broadcast %3 : vector<1x128xf32> to vector<8x128xf32>
    %9 = arith.addf %7, %8 : vector<8x128xf32>
    %cst_9 = arith.constant 0.000000e+00 : f32
    %10 = vector.broadcast %cst_9 : f32 to vector<8x128xf32>
    %11 = arith.cmpf ogt, %9, %10 : vector<8x128xf32>
    %cst_10 = arith.constant 0.000000e+00 : f32
    %12 = vector.broadcast %cst_10 : f32 to vector<8x128xf32>
    %13 = arith.minimumf %9, %12 : vector<8x128xf32>
    %14 = math.exp %13 : vector<8x128xf32>
    %cst_11 = arith.constant 1.000000e+00 : f32
    %15 = vector.broadcast %cst_11 : f32 to vector<8x128xf32>
    %16 = arith.subf %14, %15 : vector<8x128xf32>
    %cst_12 = arith.constant 1.67326319 : f32
    %17 = vector.broadcast %cst_12 : f32 to vector<8x128xf32>
    %18 = arith.mulf %17, %16 : vector<8x128xf32>
    %19 = arith.select %11, %9, %18 : vector<8x128xi1>, vector<8x128xf32>
    %cst_13 = arith.constant 1.05070102 : f32
    %20 = vector.broadcast %cst_13 : f32 to vector<8x128xf32>
    %21 = arith.mulf %20, %19 : vector<8x128xf32>
    %cst_14 = arith.constant dense<0.000000e+00> : vector<8x128xf32>
    %22 = tpu.matmul %21, %1, %cst_14 {dimension_numbers = #tpu.dot_dimension_numbers<[1], [0], [0], [1], [0, 0, 1, 1], [], []>} : vector<8x128xf32>, vector<128x128xf32>, vector<8x128xf32> -> vector<8x128xf32>
    %23 = vector.broadcast %4 : vector<1x128xf32> to vector<8x128xf32>
    %24 = arith.addf %22, %23 : vector<8x128xf32>
    %cst_15 = arith.constant 0.000000e+00 : f32
    %25 = vector.broadcast %cst_15 : f32 to vector<8x128xf32>
    %26 = arith.cmpf ogt, %24, %25 : vector<8x128xf32>
    %cst_16 = arith.constant 0.000000e+00 : f32
    %27 = vector.broadcast %cst_16 : f32 to vector<8x128xf32>
    %28 = arith.minimumf %24, %27 : vector<8x128xf32>
    %29 = math.exp %28 : vector<8x128xf32>
    %cst_17 = arith.constant 1.000000e+00 : f32
    %30 = vector.broadcast %cst_17 : f32 to vector<8x128xf32>
    %31 = arith.subf %29, %30 : vector<8x128xf32>
    %cst_18 = arith.constant 1.67326319 : f32
    %32 = vector.broadcast %cst_18 : f32 to vector<8x128xf32>
    %33 = arith.mulf %32, %31 : vector<8x128xf32>
    %34 = arith.select %26, %24, %33 : vector<8x128xi1>, vector<8x128xf32>
    %cst_19 = arith.constant 1.05070102 : f32
    %35 = vector.broadcast %cst_19 : f32 to vector<8x128xf32>
    %36 = arith.mulf %35, %34 : vector<8x128xf32>
    %cst_20 = arith.constant dense<0.000000e+00> : vector<8x128xf32>
    %37 = tpu.matmul %36, %2, %cst_20 {dimension_numbers = #tpu.dot_dimension_numbers<[1], [0], [0], [1], [0, 0, 1, 1], [], []>} : vector<8x128xf32>, vector<128x128xf32>, vector<8x128xf32> -> vector<8x128xf32>
    %38 = vector.broadcast %5 : vector<1x128xf32> to vector<8x128xf32>
    %39 = arith.addf %37, %38 : vector<8x128xf32>
    %cst_21 = arith.constant 0.000000e+00 : f32
    %40 = vector.broadcast %cst_21 : f32 to vector<8x128xf32>
    %41 = arith.cmpf ogt, %39, %40 : vector<8x128xf32>
    %cst_22 = arith.constant 0.000000e+00 : f32
    %42 = vector.broadcast %cst_22 : f32 to vector<8x128xf32>
    %43 = arith.minimumf %39, %42 : vector<8x128xf32>
    %44 = math.exp %43 : vector<8x128xf32>
    %cst_23 = arith.constant 1.000000e+00 : f32
    %45 = vector.broadcast %cst_23 : f32 to vector<8x128xf32>
    %46 = arith.subf %44, %45 : vector<8x128xf32>
    %cst_24 = arith.constant 1.67326319 : f32
    %47 = vector.broadcast %cst_24 : f32 to vector<8x128xf32>
    %48 = arith.mulf %47, %46 : vector<8x128xf32>
    %49 = arith.select %41, %39, %48 : vector<8x128xi1>, vector<8x128xf32>
    %cst_25 = arith.constant 1.05070102 : f32
    %50 = vector.broadcast %cst_25 : f32 to vector<8x128xf32>
    %51 = arith.mulf %50, %49 : vector<8x128xf32>
    %c0_26 = arith.constant 0 : index
    %c0_27 = arith.constant 0 : index
    %52 = vector.load %arg4[%c0_26, %c0_27] : memref<8x128xf32, #tpu.memory_space<vmem>>, vector<8x128xf32>
    tpu.vector_store %arg4[%c0_26, %c0_27], %51 {strides = array<i32>} : memref<8x128xf32, #tpu.memory_space<vmem>>, vector<8x128xf32>,
    return
  }
  func.func @transform_0(%arg0: i32) -> (i32, i32) {
    %c0_i32 = arith.constant 0 : i32
    %c0_i32_0 = arith.constant 0 : i32
    return %arg0, %c0_i32 : i32, i32
  }
  func.func @transform_1(%arg0: i32) -> (i32, i32) {
    %c0_i32 = arith.constant 0 : i32
    %c0_i32_0 = arith.constant 0 : i32
    %c0_i32_1 = arith.constant 0 : i32
    return %c0_i32, %c0_i32_0 : i32, i32
  }
  func.func @transform_2(%arg0: i32) -> (i32, i32) {
    %c0_i32 = arith.constant 0 : i32
    %c0_i32_0 = arith.constant 0 : i32
    %c0_i32_1 = arith.constant 0 : i32
    return %c0_i32, %c0_i32_0 : i32, i32
  }
  func.func @transform_3(%arg0: i32) -> (i32, i32) {
    %c0_i32 = arith.constant 0 : i32
    %c0_i32_0 = arith.constant 0 : i32
    return %arg0, %c0_i32 : i32, i32
  }
}

</mosaic_0001>

<bundles_post_ra>
// kernel: tpu_custom_call.1
= control target key start
LH: loop header
LB: loop body
LE: loop exit
PB: predicated region body
PF: predicated region fallthrough
CT: control target
= control target key end

     0   :  { %8 = vsyncpa [#allocation3], 0  ;;  %s416_s0 = inlined_call_operand.hbm [shape: f32[8,240], index: 0, kind: input, shape index: {}]   ;;  %s417_s1 = inlined_call_operand.hbm [shape: f32[496,128], index: 1, kind: input, shape index: {}]   ;;  %s418_s2 = inlined_call_operand.hbm [shape: f32[24,128], index: 2, kind: input, shape index: {}]   ;;  %s419_s3 = inlined_call_operand.hbm [shape: f32[8,128], index: 3, kind: output, shape index: {}]  }
   0x1   :  { %9 = vsyncpa [#allocation6], 0  ;;  %s26_s14 = sshll.u32 %s417_s1, 4  ;;  %s27_s14 = int_to_ptr.hbm [resolvable:$true] %s26_s14 }
   0x2   :  { %10 = vsyncpa [#allocation4], 0  ;;  %s378_s15 = smov [#allocation5]   ;;  %s16_s19 = sshll.u32 %s416_s0, 4  ;;  %s17_s19 = int_to_ptr.hbm [resolvable:$true] %s16_s19 }
   0x3   :  { %s28_s16 = sshll.u32 %s378_s15, 4  ;;  %s379_s20 = smov 128   ;;  %s29_s16 = int_to_ptr.vmem [resolvable:$true] %s28_s16 }
   0x4   :  { %s380_s21 = smov 8   ;;  %s381_s22 = smov [#allocation2]  }
   0x5   :  { %34 = dma.hbm_to_vmem [thread:$0]  %s27_s14, 7936, %s29_s16, [#allocation6], %s379_s20, %s379_s20, %s380_s21  }
   0x6   :  { %s18_s23 = sshll.u32 %s381_s22, 4  ;;  %s39_s26 = sshll.u32 %s418_s2, 4  ;;  %s19_s23 = int_to_ptr.vmem [resolvable:$true] %s18_s23  ;;  %s40_s26 = int_to_ptr.hbm [resolvable:$true] %s39_s26 }
   0x7   :  { %21 = dma.hbm_to_vmem [thread:$0]  %s17_s19, 256, %s19_s23, [#allocation3]  }
   0x8   :  { %s382_s1 = smov [#allocation7]  }
   0x9   :  { %s41_s27 = sshll.u32 %s382_s1, 4  ;;  %s42_s27 = int_to_ptr.vmem [resolvable:$true] %s41_s27 }
   0xa   :  { %47 = dma.hbm_to_vmem [thread:$0]  %s40_s26, 384, %s42_s27, [#allocation6], %s379_s20, %s379_s20, %s380_s21  }
   0xb   :  { %372 = dma.done.wait [#allocation3], 256  }
   0xc   :  { %373 = vsyncadd [#allocation3], 4294967040 }
   0xd   :  { %374 = dma.done.wait [#allocation6], 8320  }
   0xe   :  { %375 = vsyncadd [#allocation6], 4294958976  ;;  %v75_v0 = vld [vmem:[#allocation5 + $0x78] sm:$0xff]  ;;  %v74_v1 = vld [vmem:[#allocation5 + $0x70] sm:$0xff]  ;;  %vm128_vm0 = vcmask 916480   ;;  %s383_s0 = smov [#allocation8]  }
   0xf   :  { %132 = vmatpush.msra.mxu0 %v75_v0  ;;  %v89_v2 = vld [vmem:[#allocation5 + $0xe8] sm:$0xff]  ;;  %v88_v4 = vld [vmem:[#allocation5 + $0xe0] sm:$0xff]  ;;  %v87_v5 = vld [vmem:[#allocation5 + $0xd8] sm:$0xff]  ;;  %s244_s2 = sshll.u32 %s383_s0, 4  ;;  %s246_s30 = sshll.u32 %s419_s3, 4  ;;  %s245_s2 = int_to_ptr.vmem [resolvable:$true] %s244_s2  ;;  %s247_s30 = int_to_ptr.hbm [resolvable:$true] %s246_s30 }
  0x10   :  { %v73_v3 = vld [vmem:[#allocation5 + $0x68] sm:$0xff]  ;;  %154 = vmatpush.msra.mxu1 %v89_v2  ;;  %v72_v6 = vld [vmem:[#allocation5 + $0x60] sm:$0xff]  ;;  %v86_v7 = vld [vmem:[#allocation5 + $0xd0] sm:$0xff] }
  0x11   :  { %133 = vmatpush.msra.mxu0 %v74_v1  ;;  %v71_v8 = vld [vmem:[#allocation5 + $0x58] sm:$0xff]  ;;  %v85_v9 = vld [vmem:[#allocation5 + $0xc8] sm:$0xff]  ;;  %v70_v10 = vld [vmem:[#allocation5 + $0x50] sm:$0xff] }
  0x12   :  { %155 = vmatpush.msra.mxu1 %v88_v4  ;;  %v84_v11 = vld [vmem:[#allocation5 + $0xc0] sm:$0xff]  ;;  %v69_v12 = vld [vmem:[#allocation5 + $0x48] sm:$0xff]  ;;  %v83_v15 = vld [vmem:[#allocation5 + $0xb8] sm:$0xff] }
  0x13   :  { %134 = vmatpush.msra.mxu0 %v73_v3  ;;  %v105_v13 = vld [vmem:[#allocation5 + $0x168] sm:$0xff]  ;;  %v68_v14 = vld [vmem:[#allocation5 + $0x40] sm:$0xff]  ;;  %v103_v17 = vld [vmem:[#allocation5 + $0x158] sm:$0xff] }
  0x14   :  { %156 = vmatpush.msra.mxu1 %v87_v5  ;;  %181 = vmatpush.msra.mxu2 %v105_v13  ;;  %v104_v16 = vld [vmem:[#allocation5 + $0x160] sm:$0xff]  ;;  %v82_v18 = vld [vmem:[#allocation5 + $0xb0] sm:$0xff]  ;;  %v67_v19 = vld [vmem:[#allocation5 + $0x38] sm:$0xff] }
  0x15   :  { %135 = vmatpush.msra.mxu0 %v72_v6  ;;  %v102_v20 = vld [vmem:[#allocation5 + $0x150] sm:$0xff]  ;;  %v81_v21 = vld [vmem:[#allocation5 + $0xa8] sm:$0xff]  ;;  %v80_v23 = vld [vmem:[#allocation5 + $0xa0] sm:$0xff] }
  0x16   :  { %157 = vmatpush.msra.mxu1 %v86_v7  ;;  %182 = vmatpush.msra.mxu2 %v104_v16  ;;  %v66_v22 = vld [vmem:[#allocation5 + $0x30] sm:$0xff]  ;;  %v65_v24 = vld [vmem:[#allocation5 + $0x28] sm:$0xff]  ;;  %v79_v25 = vld [vmem:[#allocation5 + $0x98] sm:$0xff] }
  0x17   :  { %136 = vmatpush.msra.mxu0 %v71_v8  ;;  %v64_v26 = vld [vmem:[#allocation5 + $0x20] sm:$0xff]  ;;  %v78_v27 = vld [vmem:[#allocation5 + $0x90] sm:$0xff]  ;;  %v63_v28 = vld [vmem:[#allocation5 + $0x18] sm:$0xff] }
  0x18   :  { %158 = vmatpush.msra.mxu1 %v85_v9  ;;  %183 = vmatpush.msra.mxu2 %v103_v17  ;;  %v77_v29 = vld [vmem:[#allocation5 + $0x88] sm:$0xff]  ;;  %v62_v30 = vld [vmem:[#allocation5 + $0x10] sm:$0xff]  ;;  %v76_v31 = vld [vmem:[#allocation5 + $0x80] sm:$0xff] }
  0x19   :  { %137 = vmatpush.msra.mxu0 %v70_v10  ;;  %v61_v32 = vld [vmem:[#allocation5 + $0x8] sm:$0xff]  ;;  %v126_v33 = vld [vmem:[#allocation2 + $0x8] sm:$0xff]  ;;  %v60_v34 = vld [vmem:[#allocation5] sm:$0xff] }
  0x1a   :  { %159 = vmatpush.msra.mxu1 %v84_v11  ;;  %184 = vmatpush.msra.mxu2 %v102_v20  ;;  %v125_v35 = vld [vmem:[#allocation2] sm:$0xff]  ;;  %v101_v36 = vld [vmem:[#allocation5 + $0x148] sm:$0xff]  ;;  %v100_v37 = vld [vmem:[#allocation5 + $0x140] sm:$0xff] }
  0x1b   :  { %138 = vmatpush.msra.mxu0 %v69_v12  ;;  %v99_v38 = vld [vmem:[#allocation5 + $0x138] sm:$0xff]  ;;  %v98_v39 = vld [vmem:[#allocation5 + $0x130] sm:$0xff]  ;;  %v97_v40 = vld [vmem:[#allocation5 + $0x128] sm:$0xff] }
  0x1c   :  { %160 = vmatpush.msra.mxu1 %v83_v15  ;;  %185 = vmatpush.msra.mxu2 %v101_v36  ;;  %v96_v41 = vld [vmem:[#allocation5 + $0x120] sm:$0xff]  ;;  %v95_v42 = vld [vmem:[#allocation5 + $0x118] sm:$0xff]  ;;  %v94_v43 = vld [vmem:[#allocation5 + $0x110] sm:$0xff] }
  0x1d   :  { %139 = vmatpush.msra.mxu0 %v68_v14  ;;  %v93_v44 = vld [vmem:[#allocation5 + $0x108] sm:$0xff]  ;;  %v92_v45 = vld [vmem:[#allocation5 + $0x100] sm:$0xff]  ;;  %v91_v46 = vld [vmem:[#allocation5 + $0xf8] sm:$0xff] }
  0x1e   :  { %161 = vmatpush.msra.mxu1 %v82_v18  ;;  %186 = vmatpush.msra.mxu2 %v100_v37  ;;  %v90_v47 = vld [vmem:[#allocation5 + $0xf0] sm:$0xff]  ;;  %v121_v48 = vld [vmem:[#allocation5 + $0x1e8] sm:$0xff]  ;;  %v120_v49 = vld [vmem:[#allocation5 + $0x1e0] sm:$0xff] }
  0x1f   :  { %140 = vmatpush.msra.mxu0 %v67_v19  ;;  %210 = vmatpush.msra.mxu3 %v121_v48  ;;  %v119_v50 = vld [vmem:[#allocation5 + $0x1d8] sm:$0xff]  ;;  %v118_v51 = vld [vmem:[#allocation5 + $0x1d0] sm:$0xff]  ;;  %v117_v53 = vld [vmem:[#allocation5 + $0x1c8] sm:$0xff] }
  0x20   :  { %162 = vmatpush.msra.mxu1 %v81_v21  ;;  %187 = vmatpush.msra.mxu2 %v99_v38  ;;  %v267_v52 = vld [vmem:[#allocation7] ss:$0 sm:$0xff]  ;;  %v116_v1 = vld [vmem:[#allocation5 + $0x1c0] sm:$0xff]  ;;  %v115_v2 = vld [vmem:[#allocation5 + $0x1b8] sm:$0xff] }
  0x21   :  { %141 = vmatpush.msra.mxu0 %v66_v22  ;;  %211 = vmatpush.msra.mxu3 %v120_v49  ;;  %v114_v3 = vld [vmem:[#allocation5 + $0x1b0] sm:$0xff]  ;;  %v113_v4 = vld [vmem:[#allocation5 + $0x1a8] sm:$0xff]  ;;  %v112_v5 = vld [vmem:[#allocation5 + $0x1a0] sm:$0xff] }
  0x22   :  { %163 = vmatpush.msra.mxu1 %v80_v23  ;;  %188 = vmatpush.msra.mxu2 %v98_v39  ;;  %v111_v6 = vld [vmem:[#allocation5 + $0x198] sm:$0xff]  ;;  %v110_v7 = vld [vmem:[#allocation5 + $0x190] sm:$0xff]  ;;  %v109_v8 = vld [vmem:[#allocation5 + $0x188] sm:$0xff] }
  0x23   :  { %142 = vmatpush.msra.mxu0 %v65_v24  ;;  %212 = vmatpush.msra.mxu3 %v119_v50  ;;  %v108_v9 = vld [vmem:[#allocation5 + $0x180] sm:$0xff]  ;;  %v107_v10 = vld [vmem:[#allocation5 + $0x178] sm:$0xff]  ;;  %v106_v11 = vld [vmem:[#allocation5 + $0x170] sm:$0xff] }
  0x24   :  { %164 = vmatpush.msra.mxu1 %v79_v25  ;;  %189 = vmatpush.msra.mxu2 %v97_v40  ;;  %v268_v12 = vld [vmem:[#allocation7 + $0x8] ss:$0 sm:$0xff]  ;;  %v269_v22 = vld [vmem:[#allocation7 + $0x10] ss:$0 sm:$0xff] }
  0x25   :  { %143 = vmatpush.msra.mxu0 %v64_v26  ;;  %213 = vmatpush.msra.mxu3 %v118_v51 }
  0x26   :  { %165 = vmatpush.msra.mxu1 %v78_v27  ;;  %190 = vmatpush.msra.mxu2 %v96_v41 }
  0x27   :  { %144 = vmatpush.msra.mxu0 %v63_v28  ;;  %214 = vmatpush.msra.mxu3 %v117_v53 }
  0x28   :  { %166 = vmatpush.msra.mxu1 %v77_v29  ;;  %191 = vmatpush.msra.mxu2 %v95_v42 }
  0x29   :  { %145 = vmatpush.msra.mxu0 %v62_v30  ;;  %215 = vmatpush.msra.mxu3 %v116_v1 }
  0x2a   :  { %167 = vmatpush.msra.mxu1 %v76_v31  ;;  %192 = vmatpush.msra.mxu2 %v94_v43 }
  0x2b   :  { %146 = vmatpush.msra.mxu0 %v61_v32  ;;  %257 = vmatmul.msk.f32.vlgmr.msra.gmra.mxu1 %vm128_vm0, %v126_v33 }
  0x2c   :  { %193 = vmatpush.msra.mxu2 %v93_v44  ;;  %216 = vmatpush.msra.mxu3 %v115_v2 }
  0x2d   :  { %147 = vmatpush.msra.mxu0 %v60_v34 }
  0x2e   :  { %148 = vmatmul.f32.vlgmr.msra.gmra.mxu0 %v125_v35  ;;  %194 = vmatpush.msra.mxu2 %v92_v45 }
  0x2f   :  { %217 = vmatpush.msra.mxu3 %v114_v3 }
  0x30   :  { %195 = vmatpush.msra.mxu2 %v91_v46 }
  0x31   :  { %218 = vmatpush.msra.mxu3 %v113_v4 }
  0x32   :  { %196 = vmatpush.msra.mxu2 %v90_v47 }
  0x33   :  { %219 = vmatpush.msra.mxu3 %v112_v5 }
  0x35   :  { %220 = vmatpush.msra.mxu3 %v111_v6 }
  0x37   :  { %221 = vmatpush.msra.mxu3 %v110_v7 }
  0x39   :  { %222 = vmatpush.msra.mxu3 %v109_v8 }
  0x3b   :  { %223 = vmatpush.msra.mxu3 %v108_v9 }
  0x3d   :  { %224 = vmatpush.msra.mxu3 %v107_v10 }
  0x3f   :  { %225 = vmatpush.msra.mxu3 %v106_v11 }
  0xa8   :  { %v169_v55 = vpop.f32.mrf.mxu1 }
  0xab   :  { %v149_v54 = vpop.f32.mrf.mxu0 }
  0xac   :  { %v150_v56 = vadd.f32 %v267_v52, %v149_v54 }
  0xae   :  { %v170_v57 = vadd.f32 %v169_v55, %v150_v56 }
  0xb0   :  { %v173_v58 = vmin.f32 %v170_v57, 0.0  ;;  %vm172_vm1 = vcmp.gt.f32.partialorder %v170_v57, 0.0 }
  0xb2   :  { %v174_v59 = vmul.f32 1.442695, %v173_v58 }
  0xb4   :  { %270 = vpow2.f32 %v174_v59 }
  0xba   :  { %v271_v60 = vpop.eup %270 }
  0xbb   :  { %v258_v61 = vadd.f32 -1.0, %v271_v60 }
  0xbd   :  { %v177_v62 = vmul.f32 1.6732632, %v258_v61 }
  0xbf   :  { %v178_v63 = vsel %vm172_vm1, %v170_v57, %v177_v62 }
  0xc0   :  { %v179_v0 = vmul.f32 1.050701, %v178_v63 }
  0xc2   :  { %197 = vmatmul.f32.vlgmr.msra.gmra.mxu2 %v179_v0 }
 0x145   :  { %v198_v13 = vpop.f32.mrf.mxu2 }
 0x146   :  { %v199_v14 = vadd.f32 %v268_v12, %v198_v13 }
 0x148   :  { %v202_v15 = vmin.f32 %v199_v14, 0.0  ;;  %vm201_vm2 = vcmp.gt.f32.partialorder %v199_v14, 0.0 }
 0x14a   :  { %v203_v16 = vmul.f32 1.442695, %v202_v15 }
 0x14c   :  { %272 = vpow2.f32 %v203_v16 }
 0x152   :  { %v273_v17 = vpop.eup %272 }
 0x153   :  { %v259_v18 = vadd.f32 -1.0, %v273_v17 }
 0x155   :  { %v206_v19 = vmul.f32 1.6732632, %v259_v18 }
 0x157   :  { %v207_v20 = vsel %vm201_vm2, %v199_v14, %v206_v19 }
 0x158   :  { %v208_v21 = vmul.f32 1.050701, %v207_v20 }
 0x15a   :  { %226 = vmatmul.f32.vlgmr.msra.gmra.mxu3 %v208_v21 }
 0x1dd   :  { %v227_v23 = vpop.f32.mrf.mxu3 }
 0x1de   :  { %v228_v24 = vadd.f32 %v269_v22, %v227_v23 }
 0x1e0   :  { %v231_v25 = vmin.f32 %v228_v24, 0.0  ;;  %vm230_vm3 = vcmp.gt.f32.partialorder %v228_v24, 0.0 }
 0x1e2   :  { %v232_v26 = vmul.f32 1.442695, %v231_v25 }
 0x1e4   :  { %274 = vpow2.f32 %v232_v26 }
 0x1ea   :  { %v275_v27 = vpop.eup %274 }
 0x1eb   :  { %v260_v28 = vadd.f32 -1.0, %v275_v27 }
 0x1ed   :  { %v235_v29 = vmul.f32 1.6732632, %v260_v28 }
 0x1ef   :  { %v236_v30 = vsel %vm230_vm3, %v228_v24, %v235_v29 }
 0x1f0   :  { %v237_v31 = vmul.f32 1.050701, %v236_v30 }
 0x1f2   :  { %238 = vst [vmem:[#allocation8] sm:$0xff] %v237_v31 }
 0x1f3   :  { %249 = dma.vmem_to_hbm [thread:$0]  %s245_s2, 128, %s247_s30, [#allocation4]  }
 0x1f4   :  { %376 = dma.done.wait [#allocation4], 128  }
 0x1f5   :  { %377 = vsyncadd [#allocation4], 4294967168 }
 0x1f6   :  { %254 = vsyncpa [#allocation3], 1 }
 0x1f7   :  { %255 = vsyncpa [#allocation6], 1 }
 0x1f8   :  { %256 = vsyncpa [#allocation4], 1 }

</bundles_post_ra>
